<compile_context>
chip_gen: v5e
topology: v5e:2x2
jax: 0.10.0
libtpu: 0.0.40
codegen_flags: <defaults>
</compile_context>

<pallas_src>
import jax
import jax.numpy as jnp
from jax.experimental import pallas as pl
from jax.experimental.pallas import tpu as pltpu


def _softplus(x):
    # PyTorch nn.Softplus(beta=1, threshold=20): linear above the threshold.
    return jnp.where(x > 20.0, x, jnp.log1p(jnp.exp(jnp.minimum(x, 20.0))))


def _batchnorm_train(x, eps=1e-5):
    # BatchNorm1d(affine=False) in training mode: batch stats, biased variance.
    # Two-pass variance (x - mean)^2 in f32 to avoid cancellation on large-mean activations.
    mean = jnp.mean(x, axis=0, keepdims=True)
    var = jnp.mean((x - mean) ** 2, axis=0, keepdims=True)
    return (x - mean) * jax.lax.rsqrt(var + eps)


def _round_up(n, m):
    return (n + m - 1) // m * m


def _pad2(a, rows, cols):
    return jnp.pad(a, ((0, rows - a.shape[0]), (0, cols - a.shape[1])))


def inference_network_kernel(
    bow_ref, emb_ref,          # (TB, V), (TB, E)  -- compute dtype (f32 or bf16)
    w1b_ref,                   # bow half of input_layer:        (V, H0p)
    wf_ref, bf_ref,            # folded adapt_bert@input_layer:  (E, H0p), (1, H0p) f32
    w2_ref, b2_ref,            # hiddens.l_0:                    (H0p, H1p), (1, H1p) f32
    wh_ref, bh_ref,            # fused heads [mu | sigma]:       (H1p, K2p), (1, K2p) f32
    z_ref,                     # output: (TB, K2p) pre-BatchNorm (mu_pre | sig_pre | 0-pad)
):
    f32 = jnp.float32
    # input_layer with adapt_bert folded in: no concat, one matmul fewer; the two dots
    # sum in the f32 MXU accumulator.
    h = (
        jnp.dot(bow_ref[...], w1b_ref[...], preferred_element_type=f32)
        + jnp.dot(emb_ref[...], wf_ref[...], preferred_element_type=f32)
        + bf_ref[...]
    )
    h = _softplus(h)
    # hiddens: single Linear + Softplus. Cast only the dot operand to the weight dtype
    # (bf16 when enabled); bias/softplus stay f32.
    h = _softplus(
        jnp.dot(h.astype(w2_ref.dtype), w2_ref[...], preferred_element_type=f32) + b2_ref[...]
    )
    # TODO(synk): nn.Dropout(p=0.2) left as identity (cannot reproduce torch RNG stream).
    # fused f_mu / f_sigma -> one lane-dense (TB, K2p) store.
    z_ref[...] = (
        jnp.dot(h.astype(wh_ref.dtype), wh_ref[...], preferred_element_type=f32) + bh_ref[...]
    )


def fold_and_pack_params(p, compute_dtype=jnp.float32):
    """Fold adapt_bert into input_layer, fuse the two heads, zero-pad lane dims to 128."""
    V = p["w1"].shape[0] // 2          # input_layer is Linear(2V, H0)
    E = p["w_bert"].shape[0]
    H0 = p["w1"].shape[1]
    H1 = p["w2"].shape[1]
    K = p["w_mu"].shape[1]
    H0p, H1p, K2p = _round_up(H0, 128), _round_up(H1, 128), _round_up(2 * K, 128)

    w1_bow = p["w1"][:V, :]            # (V, H0)
    w1_bert = p["w1"][V:, :]           # (V, H0)
    # Algebraic fold (exact in f32; done once, outside the kernel):
    w_fold = p["w_bert"] @ w1_bert                       # (E, H0)
    b_fold = p["b_bert"] @ w1_bert + p["b1"]             # (1, H0)
    w_head = jnp.concatenate([p["w_mu"], p["w_sigma"]], axis=1)   # (H1, 2K)
    b_head = jnp.concatenate([p["b_mu"], p["b_sigma"]], axis=1)   # (1, 2K)

    cd = compute_dtype
    packed = dict(
        w1_bow=_pad2(w1_bow, V, H0p).astype(cd),
        w_fold=_pad2(w_fold, E, H0p).astype(cd),
        b_fold=_pad2(b_fold, 1, H0p),                    # biases stay f32
        w2=_pad2(p["w2"], H0p, H1p).astype(cd),
        b2=_pad2(p["b2"], 1, H1p),
        w_head=_pad2(w_head, H1p, K2p).astype(cd),
        b_head=_pad2(b_head, 1, K2p),
    )
    dims = dict(V=V, E=E, H0p=H0p, H1p=H1p, K=K, K2p=K2p)
    return packed, dims


def _pick_batch_tile(B):
    # Prefer >=2 grid steps (so v7x's two TensorCores both work), tile <= 512, multiple of 8.
    for tb in (512, 256, 128, 64, 32, 16, 8):
        if tb < B and B % tb == 0:
            return tb
    return B  # single-step grid (tiny batches)
    # TODO(synk): pad the batch (and exclude padded rows from BatchNorm stats) for
    # non-divisible B at production sizes.


def inference_network_forward(bow, embedding, packed, dims, compute_dtype=jnp.float32):
    B, V = bow.shape
    E = embedding.shape[1]
    H0p, H1p, K, K2p = dims["H0p"], dims["H1p"], dims["K"], dims["K2p"]

    TB = _pick_batch_tile(B)
    assert B % TB == 0
    grid = (B // TB,)

    bow_c = bow.astype(compute_dtype)
    emb_c = embedding.astype(compute_dtype)

    def _full(shape):
        # Whole-array-resident block (weights are small post-fold and reused every grid step).
        return pl.BlockSpec(shape, lambda i: (0,) * len(shape))

    in_specs = [
        pl.BlockSpec((TB, V), lambda i: (i, 0)),   # bow
        pl.BlockSpec((TB, E), lambda i: (i, 0)),   # embedding
        _full((V, H0p)),                           # w1_bow
        _full((E, H0p)), _full((1, H0p)),          # folded adapt_bert @ input_layer
        _full((H0p, H1p)), _full((1, H1p)),        # hiddens.l_0
        _full((H1p, K2p)), _full((1, K2p)),        # fused f_mu | f_sigma
    ]

    itemsize = jnp.dtype(compute_dtype).itemsize
    flops = 2 * B * (V * H0p + E * H0p + H0p * H1p + H1p * K2p)
    transcendentals = 2 * B * (H0p + H1p)          # exp + log1p per softplus element
    bytes_accessed = (
        B * (V + E) * itemsize
        + (V * H0p + E * H0p + H0p * H1p + H1p * K2p) * itemsize
        + (H0p + H1p + K2p) * 4
        + B * K2p * 4
    )

    z_pre = pl.pallas_call(
        inference_network_kernel,
        out_shape=jax.ShapeDtypeStruct((B, K2p), jnp.float32),
        grid=grid,
        in_specs=in_specs,
        out_specs=pl.BlockSpec((TB, K2p), lambda i: (i, 0)),
        compiler_params=pltpu.CompilerParams(
            dimension_semantics=("parallel",),
            vmem_limit_bytes=48 * 1024 * 1024,     # above v5e/v6e scoped defaults, under v7x 64 MiB
        ),
        cost_estimate=pl.CostEstimate(
            flops=flops, transcendentals=transcendentals, bytes_accessed=bytes_accessed
        ),
    )(
        bow_c, emb_c,
        packed["w1_bow"],
        packed["w_fold"], packed["b_fold"],
        packed["w2"], packed["b2"],
        packed["w_head"], packed["b_head"],
    )

    # BatchNorm needs full-batch statistics, so it lives outside the batch-tiled kernel.
    # mu and log_sigma share no columns, so normalizing the packed slab is exact; drop the
    # lane padding before computing statistics.
    z = _batchnorm_train(z_pre[:, : 2 * K])
    return z[:, :K], z[:, K:]


def _reference_forward(bow, embedding, p):
    # Pure-JAX mirror of the PyTorch module (training-mode BN, dropout as identity).
    x_bert = embedding @ p["w_bert"] + p["b_bert"]
    x = jnp.concatenate([bow, x_bert], axis=1)
    h = _softplus(x @ p["w1"] + p["b1"])
    h = _softplus(h @ p["w2"] + p["b2"])
    mu = _batchnorm_train(h @ p["w_mu"] + p["b_mu"])
    log_sigma = _batchnorm_train(h @ p["w_sigma"] + p["b_sigma"])
    return mu, log_sigma


def _init_linear(key, fan_in, fan_out):
    # Deterministic analogue of torch.nn.Linear default init: U(-1/sqrt(fan_in), 1/sqrt(fan_in)),
    # already transposed to (in, out); bias kept as (1, out) for lane-friendly broadcast.
    kw, kb = jax.random.split(key)
    bound = 1.0 / float(fan_in) ** 0.5
    w = jax.random.uniform(kw, (fan_in, fan_out), jnp.float32, -bound, bound)
    b = jax.random.uniform(kb, (1, fan_out), jnp.float32, -bound, bound)
    return w, b


if __name__ == "__main__":
    # input_size=V, bert_size=E, hidden_sizes=(H0, H1), output_size=K
    B, V, E, H0, H1, K = 16, 32, 64, 64, 32, 16

    root = jax.random.PRNGKey(0)
    k_bow, k_emb, k_ab, k_in, k_h, k_mu, k_sig = jax.random.split(root, 7)

    # Inputs: x = {'bow': (B, V), 'embedding': (B, E)}
    bow = jax.random.uniform(k_bow, (B, V), jnp.float32, 0.0, 3.0)  # bag-of-words-like counts
    embedding = jax.random.normal(k_emb, (B, E), jnp.float32)

    w_bert, b_bert = _init_linear(k_ab, E, V)        # adapt_bert: Linear(bert_size, input_size)
    w1, b1 = _init_linear(k_in, 2 * V, H0)           # input_layer: Linear(2*input_size, H0)
    w2, b2 = _init_linear(k_h, H0, H1)               # hiddens.l_0: Linear(H0, H1)
    w_mu, b_mu = _init_linear(k_mu, H1, K)           # f_mu: Linear(H1, K)
    w_sigma, b_sigma = _init_linear(k_sig, H1, K)    # f_sigma: Linear(H1, K)

    raw = dict(
        w_bert=w_bert, b_bert=b_bert,
        w1=w1, b1=b1,
        w2=w2, b2=b2,
        w_mu=w_mu, b_mu=b_mu,
        w_sigma=w_sigma, b_sigma=b_sigma,
    )
    mu_ref, ls_ref = _reference_forward(bow, embedding, raw)

    # --- f32 path (tight check) ---------------------------------------------------------
    packed, dims = fold_and_pack_params(raw, jnp.float32)
    mu, log_sigma = inference_network_forward(bow, embedding, packed, dims, jnp.float32)
    jax.block_until_ready((mu, log_sigma))
    assert mu.shape == (B, K) and log_sigma.shape == (B, K)
    assert jnp.allclose(mu, mu_ref, atol=1e-3, rtol=1e-3)
    assert jnp.allclose(log_sigma, ls_ref, atol=1e-3, rtol=1e-3)

    # --- bf16 matmul-operand path (f32 accumulation); looser check ----------------------
    packed_bf, dims_bf = fold_and_pack_params(raw, jnp.bfloat16)
    mu_bf, ls_bf = inference_network_forward(bow, embedding, packed_bf, dims_bf, jnp.bfloat16)
    jax.block_until_ready((mu_bf, ls_bf))
    assert mu_bf.shape == (B, K) and ls_bf.shape == (B, K)
    assert bool(jnp.all(jnp.isfinite(mu_bf))) and bool(jnp.all(jnp.isfinite(ls_bf)))
    assert jnp.allclose(mu_bf, mu_ref, atol=0.3)
    assert jnp.allclose(ls_bf, ls_ref, atol=0.3)

    print("KERNEL_OK")
</pallas_src>

<mosaic_0001>
module attributes {stable_mosaic.version = 11 : i64} {
  func.func @inference_network_kernel(%arg0: i32, %arg1: memref<8x32xf32, #tpu.memory_space<vmem>>, %arg2: memref<8x64xf32, #tpu.memory_space<vmem>>, %arg3: memref<32x128xf32, #tpu.memory_space<vmem>>, %arg4: memref<64x128xf32, #tpu.memory_space<vmem>>, %arg5: memref<1x128xf32, #tpu.memory_space<vmem>>, %arg6: memref<128x128xf32, #tpu.memory_space<vmem>>, %arg7: memref<1x128xf32, #tpu.memory_space<vmem>>, %arg8: memref<128x128xf32, #tpu.memory_space<vmem>>, %arg9: memref<1x128xf32, #tpu.memory_space<vmem>>, %arg10: memref<8x128xf32, #tpu.memory_space<vmem>>) attributes {dimension_semantics = [#tpu.dimension_semantics<parallel>], iteration_bounds = array<i64: 2>, scalar_prefetch = 0 : i64, scratch_operands = 0 : i64, tpu.core_type = #tpu.core_type<tc>, window_params = [{transform_indices = @transform_0, window_bounds = array<i64: 8, 32>}, {transform_indices = @transform_1, window_bounds = array<i64: 8, 64>}, {pipeline_mode = #tpu.pipeline_mode<synchronous>, transform_indices = @transform_2, window_bounds = array<i64: 32, 128>}, {pipeline_mode = #tpu.pipeline_mode<synchronous>, transform_indices = @transform_3, window_bounds = array<i64: 64, 128>}, {pipeline_mode = #tpu.pipeline_mode<synchronous>, transform_indices = @transform_4, window_bounds = array<i64: 1, 128>}, {pipeline_mode = #tpu.pipeline_mode<synchronous>, transform_indices = @transform_5, window_bounds = array<i64: 128, 128>}, {pipeline_mode = #tpu.pipeline_mode<synchronous>, transform_indices = @transform_6, window_bounds = array<i64: 1, 128>}, {pipeline_mode = #tpu.pipeline_mode<synchronous>, transform_indices = @transform_7, window_bounds = array<i64: 128, 128>}, {pipeline_mode = #tpu.pipeline_mode<synchronous>, transform_indices = @transform_8, window_bounds = array<i64: 1, 128>}, {transform_indices = @transform_9, window_bounds = array<i64: 8, 128>}]} {
    %c0 = arith.constant 0 : index
    %c0_0 = arith.constant 0 : index
    %0 = vector.load %arg1[%c0, %c0_0] : memref<8x32xf32, #tpu.memory_space<vmem>>, vector<8x32xf32>
    %c0_1 = arith.constant 0 : index
    %c0_2 = arith.constant 0 : index
    %1 = vector.load %arg3[%c0_1, %c0_2] : memref<32x128xf32, #tpu.memory_space<vmem>>, vector<32x128xf32>
    %cst = arith.constant dense<0.000000e+00> : vector<8x128xf32>
    %2 = tpu.matmul %0, %1, %cst {dimension_numbers = #tpu.dot_dimension_numbers<[1], [0], [0], [1], [0, 0, 1, 1], [], []>} : vector<8x32xf32>, vector<32x128xf32>, vector<8x128xf32> -> vector<8x128xf32>
    %c0_3 = arith.constant 0 : index
    %c0_4 = arith.constant 0 : index
    %3 = vector.load %arg2[%c0_3, %c0_4] : memref<8x64xf32, #tpu.memory_space<vmem>>, vector<8x64xf32>
    %c0_5 = arith.constant 0 : index
    %c0_6 = arith.constant 0 : index
    %4 = vector.load %arg4[%c0_5, %c0_6] : memref<64x128xf32, #tpu.memory_space<vmem>>, vector<64x128xf32>
    %cst_7 = arith.constant dense<0.000000e+00> : vector<8x128xf32>
    %5 = tpu.matmul %3, %4, %cst_7 {dimension_numbers = #tpu.dot_dimension_numbers<[1], [0], [0], [1], [0, 0, 1, 1], [], []>} : vector<8x64xf32>, vector<64x128xf32>, vector<8x128xf32> -> vector<8x128xf32>
    %6 = arith.addf %2, %5 : vector<8x128xf32>
    %c0_8 = arith.constant 0 : index
    %c0_9 = arith.constant 0 : index
    %7 = vector.load %arg5[%c0_8, %c0_9] : memref<1x128xf32, #tpu.memory_space<vmem>>, vector<1x128xf32>
    %8 = vector.broadcast %7 : vector<1x128xf32> to vector<8x128xf32>
    %9 = arith.addf %6, %8 : vector<8x128xf32>
    %cst_10 = arith.constant 2.000000e+01 : f32
    %10 = vector.broadcast %cst_10 : f32 to vector<8x128xf32>
    %11 = arith.cmpf ogt, %9, %10 : vector<8x128xf32>
    %cst_11 = arith.constant 2.000000e+01 : f32
    %12 = vector.broadcast %cst_11 : f32 to vector<8x128xf32>
    %13 = arith.minimumf %9, %12 : vector<8x128xf32>
    %14 = math.exp %13 : vector<8x128xf32>
    %15 = math.log1p %14 : vector<8x128xf32>
    %16 = arith.select %11, %9, %15 : vector<8x128xi1>, vector<8x128xf32>
    %c0_12 = arith.constant 0 : index
    %c0_13 = arith.constant 0 : index
    %17 = vector.load %arg6[%c0_12, %c0_13] : memref<128x128xf32, #tpu.memory_space<vmem>>, vector<128x128xf32>
    %cst_14 = arith.constant dense<0.000000e+00> : vector<8x128xf32>
    %18 = tpu.matmul %16, %17, %cst_14 {dimension_numbers = #tpu.dot_dimension_numbers<[1], [0], [0], [1], [0, 0, 1, 1], [], []>} : vector<8x128xf32>, vector<128x128xf32>, vector<8x128xf32> -> vector<8x128xf32>
    %c0_15 = arith.constant 0 : index
    %c0_16 = arith.constant 0 : index
    %19 = vector.load %arg7[%c0_15, %c0_16] : memref<1x128xf32, #tpu.memory_space<vmem>>, vector<1x128xf32>
    %20 = vector.broadcast %19 : vector<1x128xf32> to vector<8x128xf32>
    %21 = arith.addf %18, %20 : vector<8x128xf32>
    %cst_17 = arith.constant 2.000000e+01 : f32
    %22 = vector.broadcast %cst_17 : f32 to vector<8x128xf32>
    %23 = arith.cmpf ogt, %21, %22 : vector<8x128xf32>
    %cst_18 = arith.constant 2.000000e+01 : f32
    %24 = vector.broadcast %cst_18 : f32 to vector<8x128xf32>
    %25 = arith.minimumf %21, %24 : vector<8x128xf32>
    %26 = math.exp %25 : vector<8x128xf32>
    %27 = math.log1p %26 : vector<8x128xf32>
    %28 = arith.select %23, %21, %27 : vector<8x128xi1>, vector<8x128xf32>
    %c0_19 = arith.constant 0 : index
    %c0_20 = arith.constant 0 : index
    %29 = vector.load %arg8[%c0_19, %c0_20] : memref<128x128xf32, #tpu.memory_space<vmem>>, vector<128x128xf32>
    %cst_21 = arith.constant dense<0.000000e+00> : vector<8x128xf32>
    %30 = tpu.matmul %28, %29, %cst_21 {dimension_numbers = #tpu.dot_dimension_numbers<[1], [0], [0], [1], [0, 0, 1, 1], [], []>} : vector<8x128xf32>, vector<128x128xf32>, vector<8x128xf32> -> vector<8x128xf32>
    %c0_22 = arith.constant 0 : index
    %c0_23 = arith.constant 0 : index
    %31 = vector.load %arg9[%c0_22, %c0_23] : memref<1x128xf32, #tpu.memory_space<vmem>>, vector<1x128xf32>
    %32 = vector.broadcast %31 : vector<1x128xf32> to vector<8x128xf32>
    %33 = arith.addf %30, %32 : vector<8x128xf32>
    %c0_24 = arith.constant 0 : index
    %c0_25 = arith.constant 0 : index
    %34 = vector.load %arg10[%c0_24, %c0_25] : memref<8x128xf32, #tpu.memory_space<vmem>>, vector<8x128xf32>
    tpu.vector_store %arg10[%c0_24, %c0_25], %33 {strides = array<i32>} : memref<8x128xf32, #tpu.memory_space<vmem>>, vector<8x128xf32>,
    return
  }
  func.func @transform_0(%arg0: i32) -> (i32, i32) {
    %c0_i32 = arith.constant 0 : i32
    %c0_i32_0 = arith.constant 0 : i32
    return %arg0, %c0_i32 : i32, i32
  }
  func.func @transform_1(%arg0: i32) -> (i32, i32) {
    %c0_i32 = arith.constant 0 : i32
    %c0_i32_0 = arith.constant 0 : i32
    return %arg0, %c0_i32 : i32, i32
  }
  func.func @transform_2(%arg0: i32) -> (i32, i32) {
    %c0_i32 = arith.constant 0 : i32
    %c0_i32_0 = arith.constant 0 : i32
    %c0_i32_1 = arith.constant 0 : i32
    return %c0_i32, %c0_i32_0 : i32, i32
  }
  func.func @transform_3(%arg0: i32) -> (i32, i32) {
    %c0_i32 = arith.constant 0 : i32
    %c0_i32_0 = arith.constant 0 : i32
    %c0_i32_1 = arith.constant 0 : i32
    return %c0_i32, %c0_i32_0 : i32, i32
  }
  func.func @transform_4(%arg0: i32) -> (i32, i32) {
    %c0_i32 = arith.constant 0 : i32
    %c0_i32_0 = arith.constant 0 : i32
    %c0_i32_1 = arith.constant 0 : i32
    return %c0_i32, %c0_i32_0 : i32, i32
  }
  func.func @transform_5(%arg0: i32) -> (i32, i32) {
    %c0_i32 = arith.constant 0 : i32
    %c0_i32_0 = arith.constant 0 : i32
    %c0_i32_1 = arith.constant 0 : i32
    return %c0_i32, %c0_i32_0 : i32, i32
  }
  func.func @transform_6(%arg0: i32) -> (i32, i32) {
    %c0_i32 = arith.constant 0 : i32
    %c0_i32_0 = arith.constant 0 : i32
    %c0_i32_1 = arith.constant 0 : i32
    return %c0_i32, %c0_i32_0 : i32, i32
  }
  func.func @transform_7(%arg0: i32) -> (i32, i32) {
    %c0_i32 = arith.constant 0 : i32
    %c0_i32_0 = arith.constant 0 : i32
    %c0_i32_1 = arith.constant 0 : i32
    return %c0_i32, %c0_i32_0 : i32, i32
  }
  func.func @transform_8(%arg0: i32) -> (i32, i32) {
    %c0_i32 = arith.constant 0 : i32
    %c0_i32_0 = arith.constant 0 : i32
    %c0_i32_1 = arith.constant 0 : i32
    return %c0_i32, %c0_i32_0 : i32, i32
  }
  func.func @transform_9(%arg0: i32) -> (i32, i32) {
    %c0_i32 = arith.constant 0 : i32
    %c0_i32_0 = arith.constant 0 : i32
    return %arg0, %c0_i32 : i32, i32
  }
}

</mosaic_0001>

<bundles_post_ra>
// kernel: tpu_custom_call.1
= control target key start
LH: loop header
LB: loop body
LE: loop exit
PB: predicated region body
PF: predicated region fallthrough
CT: control target
= control target key end

     0   :  { %s1444_s0 = inlined_call_operand.hbm [shape: f32[16,32], index: 0, kind: input, shape index: {}]   ;;  %s1445_s1 = inlined_call_operand.hbm [shape: f32[16,64], index: 1, kind: input, shape index: {}]   ;;  %s1446_s2 = inlined_call_operand.hbm [shape: f32[32,128], index: 2, kind: input, shape index: {}]   ;;  %s1447_s3 = inlined_call_operand.hbm [shape: f32[64,128], index: 3, kind: input, shape index: {}]   ;;  %s1448_s4 = inlined_call_operand.vmem [shape: f32[1,128], index: 4, kind: input, shape index: {}]   ;;  %s1449_s5 = inlined_call_operand.hbm [shape: f32[128,128], index: 5, kind: input, shape index: {}]   ;;  %s1450_s6 = inlined_call_operand.vmem [shape: f32[1,128], index: 6, kind: input, shape index: {}]   ;;  %s1451_s7 = inlined_call_operand.hbm [shape: f32[128,128], index: 7, kind: input, shape index: {}]   ;;  %s1452_s8 = inlined_call_operand.vmem [shape: f32[1,128], index: 8, kind: input, shape index: {}]   ;;  %s1453_s9 = inlined_call_operand.hbm [shape: f32[16,128], index: 9, kind: output, shape index: {}]  }
   0x1   :  { %1458 = sst [smem:[#allocation24_spill]] %s1446_s2 }
   0x2   :  { %1459 = sst [smem:[#allocation25_spill]] %s1447_s3 }
   0x3   :  { %1460 = sst [smem:[#allocation26_spill]] %s1449_s5 }
   0x4   :  { %1461 = sst [smem:[#allocation27_spill]] %s1451_s7 }
   0x5   :  { %14 = vsyncpa [#allocation3], 0 }
   0x6   :  { %16 = vsyncpa [#allocation3 + $0x1], 0 }
   0x7   :  { %17 = vsyncpa [#allocation6], 0 }
   0x8   :  { %19 = vsyncpa [#allocation6 + $0x1], 0 }
   0x9   :  { %20 = vsyncpa [#allocation9], 0 }
   0xa   :  { %21 = vsyncpa [#allocation12], 0 }
   0xb   :  { %22 = vsyncpa [#allocation4], 0 }
   0xc   :  { %24 = vsyncpa [#allocation4 + $0x1], 0  ;;  %s1228_s30 = smov 0   ;;  %s1230_s10 = smov 0  }
   0xd   :  { %s1232_s11 = smov 0   ;;  %s1234_s12 = smov 0  }
   0xe LB: > { %1462 = sst [smem:[#allocation20_spill]] %s1166_s11  ;;  %s1252_s16 = sadd.s32 4294967295, %s1170_s12   ;;  %s1170_s12 = sphi %s1234_s12, %s1479_s12   ;;  %s1166_s11 = sphi %s1232_s11, %s1481_s11   ;;  %s1162_s10 = sphi %s1230_s10, %s1483_s10   ;;  %s1158_s30 = sphi %s1228_s30, %s1482_s30  }
   0xf   : > { %1463 = sst [smem:[#allocation21_spill]] %s1170_s12  ;;  %p779_p0 = scmp.ge.s32.totalorder %s1170_s12, 1 }
  0x10   : > { %s1464_s2 = sld [smem:[#allocation24_spill]]  ;;  %p51_p1 = scmp.eq.s32.totalorder %s1252_s16, 0 }
  0x11   : > { %p260_p2 = scmp.lt.s32.totalorder %s1170_s12, 3  ;;  %s1172_s18 = smov [#allocation7]  }
  0x12   : > { %s273_s19 = sshll.u32 %s1172_s18, 4  ;;  %s1466_s3 = sld [smem:[#allocation25_spill]]  ;;  %s274_s19 = int_to_ptr.vmem [resolvable:$true] %s273_s19 }
  0x13   : > { %p1257_p3 = pnand %p779_p0, %p260_p2  ;;  %s1468_s5 = sld [smem:[#allocation26_spill]] }
  0x14   : > { %s1173_s27 = smov [#allocation8]   ;;  %s1174_s29 = smov 128  }
  0x15   : > { %p825_p4 = pneg %p1257_p3  ;;  %s287_s28 = sshll.u32 %s1173_s27, 4  ;;  %s288_s28 = int_to_ptr.vmem [resolvable:$true] %s287_s28 }
  0x16   : > { %s271_s15 = sshll.u32 %s1464_s2, 4  ;;  %s1175_s13 = smov 8   ;;  %s272_s15 = int_to_ptr.hbm [resolvable:$true] %s271_s15 }
  0x17   : > { %p1269_p6 = pnand %p825_p4, %p51_p1  ;;  %s1469_s7 = sld [smem:[#allocation27_spill]] }
  0x18   : > { %s285_s22 = sshll.u32 %s1466_s3, 4  ;;  %s1176_s21 = smov [#allocation10]   ;;  %s286_s22 = int_to_ptr.hbm [resolvable:$true] %s285_s22 }
  0x19   : > { %s302_s26 = sshll.u32 %s1468_s5, 4  ;;  %s304_s24 = sshll.u32 %s1176_s21, 4  ;;  %s303_s26 = int_to_ptr.hbm [resolvable:$true] %s302_s26  ;;  %s305_s24 = int_to_ptr.vmem [resolvable:$true] %s304_s24 }
  0x1a   : > { %828 = dma.hbm_to_vmem [thread:$0]  (!%p1269_p6), %s272_s15, 512, %s274_s19, [#allocation6], %s1174_s29, %s1174_s29, %s1175_s13  }
  0x1b   : > { %831 = dma.hbm_to_vmem [thread:$0]  (!%p1269_p6), %s286_s22, 1024, %s288_s28, [#allocation9], %s1174_s29, %s1174_s29, %s1175_s13  }
  0x1c   : > { %834 = dma.hbm_to_vmem [thread:$0]  (!%p1269_p6), %s303_s26, 2048, %s305_s24, [#allocation9], %s1174_s29, %s1174_s29, %s1175_s13  }
  0x1d   : > { %s319_s20 = sshll.u32 %s1469_s7, 4  ;;  %s1177_s15 = smov [#allocation11]   ;;  %s320_s20 = int_to_ptr.hbm [resolvable:$true] %s319_s20 }
  0x1e   : > { %s321_s19 = sshll.u32 %s1177_s15, 4  ;;  %s778_s22 = sadd.s32 4294967294, %s1170_s12   ;;  %s322_s19 = int_to_ptr.vmem [resolvable:$true] %s321_s19 }
  0x1f   : > { %837 = dma.hbm_to_vmem [thread:$0]  (!%p1269_p6), %s320_s20, 2048, %s322_s19, [#allocation12], %s1174_s29, %s1174_s29, %s1175_s13  }
  0x20   : > { %s1289_s25 = sadd.s32 1, %s1170_s12   ;;  %s37_s28 = sadd.s32 1, %s1166_s11 }
  0x21   : > { %1470 = sst [smem:[#allocation22_spill]] %s1289_s25  ;;  %s34_s27 = ssub.s32 %s1170_s12, %s1289_s25 }
  0x22   : > { %p35_p7 = scmp.eq.s32.totalorder %s34_s27, 0  ;;  %p44_p8 = scmp.ne.s32.totalorder %s1166_s11, %s1162_s10 }
  0x23   : > { %p45_p9 = scmp.eq.s32.totalorder %s1170_s12, 0  ;;  %p50_p10 = scmp.ne.s32.totalorder %s1162_s10, %s1158_s30 }
  0x24   : > { %s1300_s26 = scalar_select %p35_p7, %s1166_s11, %s37_s28  }
  0x25   : > { %p1302_p11 = por %p45_p9, %p44_p8  ;;  %p1308_p12 = por %p51_p1, %p50_p10 }
  0x26   : > { %1471 = sst [smem:[#allocation23_spill]] %s1300_s26  ;;  %p247_p13 = scmp.eq.s32.totalorder %s1252_s16, 1 }
  0x27   : > { %p253_p0 = scmp.eq.s32.totalorder %s778_s22, 1  ;;  %p853_p2 = scmp.lt.s32.totalorder %s1170_s12, 2 }
  0x28   : > { %s338_s29 = sand.u32 1, %s1166_s11   ;;  %p1315_p4 = por %p247_p13, %p44_p8 }
  0x29   : > { %p1319_p6 = por %p253_p0, %p50_p10  ;;  %s1323_s20 = sshll.u32 %s338_s29, 3 }
  0x2a   : > { %s786_s21 = sshll.u32 %s1170_s12, 3  ;;  %s342_s27 = scalar_lea.vmem [#allocation2], %s1323_s20 }
  0x2b   : > { %s346_s19 = scalar_lea.hbm %s1444_s0, %s786_s21  ;;  %s350_s22 = sshll.u32 %s342_s27, 4  ;;  %s351_s22 = int_to_ptr.vmem [resolvable:$true] %s350_s22 }
  0x2c   : > { %s348_s28 = sshll.u32 %s346_s19, 4  ;;  %p1332_p7 = pnand %p853_p2, %p1302_p11  ;;  %s349_s28 = int_to_ptr.hbm [resolvable:$true] %s348_s28 }
  0x2d   : > { %s365_s7 = scalar_lea.hbm %s1445_s1, %s786_s21  ;;  %s357_s26 = sand.u32 1, %s1170_s12  }
  0x2e   : > { %s339_s11 = scalar_lea.sflag [#allocation3], %s338_s29  ;;  %s1028_s24 = sshra.s32 %s349_s28, 4  ;;  %s1029_s24 = int_to_ptr.hbm [resolvable:$true] %s1028_s24 }
  0x2f   : > { %s1030_s15 = scalar_lea.hbm %s1029_s24, 8  ;;  %p1032_p9 = pneg %p1332_p7 }
  0x30   : > { %p1031_p8 = scmp.ne.s32.totalorder %s1029_s24, %s1030_s15  ;;  %s1035_s27 = scalar_lea.hbm %s1444_s0, 16 }
  0x31   : > { %p1036_p13 = scmp.lt.s32.totalorder %s1029_s24, %s1444_s0  ;;  %p1037_p0 = scmp.lt.s32.totalorder %s1035_s27, %s1030_s15 }
  0x32   : > { %p1033_p10 = pnand %p1032_p9, %p1031_p8 }
  0x33   : > { %p1038_p2 = por %p1037_p0, %p1036_p13 }
  0x34   : > { %p1034_p11 = pneg %p1033_p10 }
  0x36   : > { %p1039_p5 = pnand %p1038_p2, %p1034_p11 }
  0x38   : > { %1042 = shalt.err (!%p1039_p5)
}
  0x39   : > { %841 = dma.hbm_to_vmem [thread:$0]  (!%p1332_p7), %s349_s28, 128, %s351_s22, %s339_s11  }
  0x3a   : > { %s367_s29 = sshll.u32 %s365_s7, 4  ;;  %s361_s21 = scalar_lea.vmem [#allocation5], %s1323_s20  ;;  %s368_s29 = int_to_ptr.hbm [resolvable:$true] %s367_s29 }
  0x3b   : > { %s369_s25 = sshll.u32 %s361_s21, 4  ;;  %s358_s14 = scalar_lea.sflag [#allocation6], %s357_s26  ;;  %s370_s25 = int_to_ptr.vmem [resolvable:$true] %s369_s25 }
  0x3c   : > { %s1058_s19 = sshra.s32 %s368_s29, 4  ;;  %s1065_s27 = scalar_lea.hbm %s1445_s1, 16  ;;  %s1059_s19 = int_to_ptr.hbm [resolvable:$true] %s1058_s19 }
  0x3d   : > { %s1060_s12 = scalar_lea.hbm %s1059_s19, 8  ;;  %p1066_p5 = scmp.lt.s32.totalorder %s1059_s19, %s1445_s1 }
  0x3e   : > { %p1061_p8 = scmp.ne.s32.totalorder %s1059_s19, %s1060_s12  ;;  %p1067_p13 = scmp.lt.s32.totalorder %s1065_s27, %s1060_s12 }
  0x40   : > { %p1063_p10 = pnand %p1061_p8, %p1032_p9  ;;  %p1068_p0 = por %p1067_p13, %p1066_p5 }
  0x42   : > { %p1064_p11 = pneg %p1063_p10 }
  0x44   : > { %p1069_p2 = pnand %p1068_p0, %p1064_p11 }
  0x46   : > { %1072 = shalt.err (!%p1069_p2)
}
  0x47   : > { %844 = dma.hbm_to_vmem [thread:$0]  (!%p1332_p7), %s368_s29, 128, %s370_s25, %s358_s14  }
  0x48   : > { %378 = sbr.rel (%p1257_p3) target bundleno = 552 (0x228), region = 56  ;;  %s1368_s7 = sand.u32 (!%p1257_p3), 1, %s1162_s10  }
  0x49   : > { %s1371_s26 = sshll.u32 (!%p1257_p3), %s1368_s7, 3  ;;  %s381_s20 = scalar_lea.sflag (!%p1257_p3), [#allocation3], %s1368_s7 }
  0x4a   : > { %s384_s12 = scalar_lea.vmem (!%p1257_p3), [#allocation2], %s1371_s26 }
  0x4d   : > { %1133 = dma.done.wait (%p1308_p12), %s381_s20, 128  }
  0x4e   : > { %1135 = vsyncadd (%p1308_p12), %s381_s20, 4294967168  ;;  %s390_s2 = sand.u32 1, %s1252_s16   ;;  %s394_s25 = scalar_lea.vmem [#allocation5], %s1371_s26 }
  0x4f   : > { %s391_s17 = scalar_lea.sflag [#allocation6], %s390_s2 }
  0x50   : > { %1137 = dma.done.wait (%p1308_p12), %s391_s17, 128  }
  0x51   : > { %1139 = vsyncadd (%p1308_p12), %s391_s17, 4294967168 }
  0x52   : > { %1141 = dma.done.wait (%p51_p1), [#allocation6], 512  }
  0x53   : > { %1143 = vsyncadd (%p51_p1), [#allocation6], 4294966784 }
  0x54   : > { %1145 = dma.done.wait (%p51_p1), [#allocation9], 3072  }
  0x55   : > { %1147 = vsyncadd (%p51_p1), [#allocation9], 4294964224 }
  0x56   : > { %1149 = dma.done.wait (%p51_p1), [#allocation12], 2048  }
  0x57   : > { %1151 = vsyncadd (%p51_p1), [#allocation12], 4294965248  ;;  %v468_v0 = vld [vmem:[#allocation8 + $0x38] sm:$0xff]  ;;  %v467_v1 = vld [vmem:[#allocation8 + $0x30] sm:$0xff]  ;;  %vm493_vm0 = vcmask 261120   ;;  %vm469_vm1 = vcmask 523264  }
  0x58   : > { %481 = vmatpush.msra.mxu0 %v468_v0  ;;  %v459_v2 = vld [vmem:[#allocation7 + $0x18] sm:$0xff]  ;;  %v466_v3 = vld [vmem:[#allocation8 + $0x28] sm:$0xff]  ;;  %v458_v4 = vld [vmem:[#allocation7 + $0x10] sm:$0xff]  ;;  %s800_s29 = sshll.u32 %s1252_s16, 3  ;;  %s454_s27 = scalar_lea.vmem [#allocation13], %s1371_s26 }
  0x59   : > { %509 = vmatpush.msra.mxu1 %v459_v2  ;;  %v457_v5 = vld [vmem:[#allocation7 + $0x8] sm:$0xff]  ;;  %v465_v6 = vld [vmem:[#allocation8 + $0x20] sm:$0xff]  ;;  %v551_v8 = vld [vmem:[#allocation10 + $0x78] sm:$0xff]  ;;  %s642_s19 = scalar_lea.hbm %s1453_s9, %s800_s29  ;;  %s644_s3 = sshll.u32 %s454_s27, 4  ;;  %s645_s3 = int_to_ptr.vmem [resolvable:$true] %s644_s3 }
  0x5a   : > { %482 = vmatpush.msra.mxu0 %v467_v1  ;;  %v456_v7 = vld [vmem:[#allocation7] sm:$0xff]  ;;  %556 = vmatpush.msra.mxu2 %v551_v8  ;;  %v464_v9 = vld [vmem:[#allocation8 + $0x18] sm:$0xff]  ;;  %v463_v11 = vld [vmem:[#allocation8 + $0x10] sm:$0xff]  ;;  %s646_s11 = sshll.u32 %s642_s19, 4  ;;  %s632_s20 = scalar_lea.sflag [#allocation4], %s1368_s7  ;;  %s647_s11 = int_to_ptr.hbm [resolvable:$true] %s646_s11 }
  0x5b   : > { %510 = vmatpush.msra.mxu1 %v458_v4  ;;  %v455_v10 = vld [vmem:[%s384_s12] sm:$0xff]  ;;  %v460_v14 = vld [vmem:[%s394_s25] sm:$0xff]  ;;  %s1102_s12 = sshra.s32 %s647_s11, 4  ;;  %s1108_s25 = scalar_lea.hbm %s1453_s9, 16  ;;  %s1103_s12 = int_to_ptr.hbm [resolvable:$true] %s1102_s12 }
  0x5c   : > { %483 = vmatpush.msra.mxu0 %v466_v3  ;;  %v462_v12 = vld [vmem:[#allocation8 + $0x8] sm:$0xff]  ;;  %v461_v13 = vld [vmem:[#allocation8] sm:$0xff]  ;;  %v550_v15 = vld [vmem:[#allocation10 + $0x70] sm:$0xff]  ;;  %s1104_s16 = scalar_lea.hbm %s1103_s12, 8  ;;  %p1109_p7 = scmp.lt.s32.totalorder %s1103_s12, %s1453_s9 }
  0x5d   : > { %511 = vmatpush.msra.mxu1 %v457_v5  ;;  %557 = vmatpush.msra.mxu2 %v550_v15  ;;  %v549_v16 = vld [vmem:[#allocation10 + $0x68] sm:$0xff]  ;;  %v548_v17 = vld [vmem:[#allocation10 + $0x60] sm:$0xff]  ;;  %v547_v18 = vld [vmem:[#allocation10 + $0x58] sm:$0xff]  ;;  %p1105_p1 = scmp.ne.s32.totalorder %s1103_s12, %s1104_s16  ;;  %p1110_p9 = scmp.lt.s32.totalorder %s1108_s25, %s1104_s16 }
  0x5e   : > { %484 = vmatpush.msra.mxu0 %v465_v6  ;;  %v546_v19 = vld [vmem:[#allocation10 + $0x50] sm:$0xff]  ;;  %v545_v20 = vld [vmem:[#allocation10 + $0x48] sm:$0xff]  ;;  %v544_v21 = vld [vmem:[#allocation10 + $0x40] sm:$0xff] }
  0x5f   : > { %512 = vmatpush.msra.mxu1 %v456_v7  ;;  %558 = vmatpush.msra.mxu2 %v549_v16  ;;  %v543_v22 = vld [vmem:[#allocation10 + $0x38] sm:$0xff]  ;;  %v542_v23 = vld [vmem:[#allocation10 + $0x30] sm:$0xff]  ;;  %v541_v24 = vld [vmem:[#allocation10 + $0x28] sm:$0xff]  ;;  %p1106_p3 = pnand %p1105_p1, %p1315_p4  ;;  %p1111_p8 = por %p1110_p9, %p1109_p7 }
  0x60   : > { %485 = vmatpush.msra.mxu0 %v464_v9  ;;  %798 = vmatmul.msk.f32.vlgmr.msra.gmra.mxu1 %vm493_vm0, %v455_v10  ;;  %v540_v25 = vld [vmem:[#allocation10 + $0x20] sm:$0xff]  ;;  %v539_v26 = vld [vmem:[#allocation10 + $0x18] sm:$0xff]  ;;  %v538_v27 = vld [vmem:[#allocation10 + $0x10] sm:$0xff] }
  0x61   : > { %559 = vmatpush.msra.mxu2 %v548_v17  ;;  %v537_v28 = vld [vmem:[#allocation10 + $0x8] sm:$0xff]  ;;  %v536_v29 = vld [vmem:[#allocation10] sm:$0xff]  ;;  %v605_v30 = vld [vmem:[#allocation11 + $0x78] sm:$0xff]  ;;  %p1107_p12 = pneg %p1106_p3 }
  0x62   : > { %486 = vmatpush.msra.mxu0 %v463_v11  ;;  %v604_v31 = vld [vmem:[#allocation11 + $0x70] sm:$0xff]  ;;  %610 = vmatpush.msra.mxu3 %v605_v30  ;;  %v897_v33 = vld [vmem:[%s1448_s4] ss:$0 sm:$0xff]  ;;  %v603_v49 = vld [vmem:[#allocation11 + $0x68] sm:$0xff] }
  0x63   : > { %560 = vmatpush.msra.mxu2 %v547_v18  ;;  %v602_v50 = vld [vmem:[#allocation11 + $0x60] sm:$0xff]  ;;  %v601_v51 = vld [vmem:[#allocation11 + $0x58] sm:$0xff]  ;;  %v600_v52 = vld [vmem:[#allocation11 + $0x50] sm:$0xff]  ;;  %p1112_p10 = pnand %p1111_p8, %p1107_p12 }
  0x64   : > { %487 = vmatpush.msra.mxu0 %v462_v12  ;;  %611 = vmatpush.msra.mxu3 %v604_v31  ;;  %v599_v53 = vld [vmem:[#allocation11 + $0x48] sm:$0xff]  ;;  %v598_v54 = vld [vmem:[#allocation11 + $0x40] sm:$0xff]  ;;  %v597_v55 = vld [vmem:[#allocation11 + $0x38] sm:$0xff] }
  0x65   : > { %561 = vmatpush.msra.mxu2 %v546_v19  ;;  %v596_v56 = vld [vmem:[#allocation11 + $0x30] sm:$0xff]  ;;  %v595_v57 = vld [vmem:[#allocation11 + $0x28] sm:$0xff]  ;;  %v594_v58 = vld [vmem:[#allocation11 + $0x20] sm:$0xff] }
  0x66   : > { %488 = vmatpush.msra.mxu0 %v461_v13  ;;  %612 = vmatpush.msra.mxu3 %v603_v49  ;;  %v593_v59 = vld [vmem:[#allocation11 + $0x18] sm:$0xff]  ;;  %v592_v60 = vld [vmem:[#allocation11 + $0x10] sm:$0xff]  ;;  %v591_v61 = vld [vmem:[#allocation11 + $0x8] sm:$0xff] }
  0x67   : > { %797 = vmatmul.msk.f32.vlgmr.msra.gmra.mxu0 %vm469_vm1, %v460_v14  ;;  %562 = vmatpush.msra.mxu2 %v545_v20  ;;  %v590_v62 = vld [vmem:[#allocation11] sm:$0xff] }
  0x68   : > { %613 = vmatpush.msra.mxu3 %v602_v50  ;;  %v898_v63 = vld [vmem:[%s1450_s6] ss:$0 sm:$0xff] }
  0x69   : > { %563 = vmatpush.msra.mxu2 %v544_v21  ;;  %v899_v14 = vld [vmem:[%s1452_s8] ss:$0 sm:$0xff] }
  0x6a   : > { %614 = vmatpush.msra.mxu3 %v601_v51 }
  0x6b   : > { %564 = vmatpush.msra.mxu2 %v543_v22 }
  0x6c   : > { %615 = vmatpush.msra.mxu3 %v600_v52 }
  0x6d   : > { %565 = vmatpush.msra.mxu2 %v542_v23 }
  0x6e   : > { %616 = vmatpush.msra.mxu3 %v599_v53 }
  0x6f   : > { %566 = vmatpush.msra.mxu2 %v541_v24 }
  0x70   : > { %617 = vmatpush.msra.mxu3 %v598_v54 }
  0x71   : > { %567 = vmatpush.msra.mxu2 %v540_v25 }
  0x72   : > { %618 = vmatpush.msra.mxu3 %v597_v55 }
  0x73   : > { %568 = vmatpush.msra.mxu2 %v539_v26 }
  0x74   : > { %619 = vmatpush.msra.mxu3 %v596_v56 }
  0x75   : > { %569 = vmatpush.msra.mxu2 %v538_v27 }
  0x76   : > { %620 = vmatpush.msra.mxu3 %v595_v57 }
  0x77   : > { %570 = vmatpush.msra.mxu2 %v537_v28 }
  0x78   : > { %621 = vmatpush.msra.mxu3 %v594_v58 }
  0x79   : > { %571 = vmatpush.msra.mxu2 %v536_v29 }
  0x7a   : > { %622 = vmatpush.msra.mxu3 %v593_v59 }
  0x7c   : > { %623 = vmatpush.msra.mxu3 %v592_v60 }
  0x7e   : > { %624 = vmatpush.msra.mxu3 %v591_v61 }
  0x80   : > { %625 = vmatpush.msra.mxu3 %v590_v62 }
  0xdd   : > { %v514_v32 = vpop.f32.mrf.mxu1 }
  0xe4   : > { %v490_v34 = vpop.f32.mrf.mxu0 }
  0xe5   : > { %v515_v35 = vadd.f32 %v514_v32, %v490_v34 }
  0xe7   : > { %v521_v36 = vadd.f32 %v897_v33, %v515_v35 }
  0xe9   : > { %v523_v37 = vmin.f32 %v521_v36, 20.0  ;;  %vm522_vm3 = vcmp.gt.f32.partialorder %v521_v36, 20.0 }
  0xeb   : > { %v524_v38 = vmul.f32 1.442695, %v523_v37 }
  0xed   : > { %900 = vpow2.f32 %v524_v38 }
  0xf3   : > { %v901_v39 = vpop.eup %900 }
  0xf4   : > { %v526_v40 = vadd.f32 1.0, %v901_v39  ;;  %v529_v41 = vmul.f32 -0.5, %v901_v39  ;;  %v532_v43 = vand.u32 2147483647, %v901_v39 }
  0xf6   : > { %902 = vlog2.f32 %v526_v40  ;;  %v530_v42 = vadd.f32 1.0, %v529_v41  ;;  %vm533_vm2 = vcmp.lt.f32.partialorder %v532_v43, 0.0004427343 }
  0xf8   : > { %v531_v46 = vmul.f32 %v901_v39, %v530_v42 }
  0xfc   : > { %v903_v44 = vpop.eup %902 }
  0xfd   : > { %v528_v45 = vmul.f32 0.6931472, %v903_v44 }
  0xff   : > { %v534_v47 = vsel %vm533_vm2, %v531_v46, %v528_v45 }
 0x100   : > { %v535_v48 = vsel %vm522_vm3, %v521_v36, %v534_v47 }
 0x101   : > { %572 = vmatmul.f32.vlgmr.msra.gmra.mxu2 %v535_v48 }
 0x184   : > { %v573_v0 = vpop.f32.mrf.mxu2 }
 0x185   : > { %v574_v1 = vadd.f32 %v898_v63, %v573_v0 }
 0x187   : > { %v577_v2 = vmin.f32 %v574_v1, 20.0  ;;  %vm576_vm5 = vcmp.gt.f32.partialorder %v574_v1, 20.0 }
 0x189   : > { %v578_v3 = vmul.f32 1.442695, %v577_v2 }
 0x18b   : > { %904 = vpow2.f32 %v578_v3 }
 0x191   : > { %v905_v4 = vpop.eup %904 }
 0x192   : > { %v580_v5 = vadd.f32 1.0, %v905_v4  ;;  %v583_v6 = vmul.f32 -0.5, %v905_v4  ;;  %v586_v8 = vand.u32 2147483647, %v905_v4 }
 0x194   : > { %906 = vlog2.f32 %v580_v5  ;;  %v584_v7 = vadd.f32 1.0, %v583_v6  ;;  %vm587_vm4 = vcmp.lt.f32.partialorder %v586_v8, 0.0004427343 }
 0x196   : > { %v585_v11 = vmul.f32 %v905_v4, %v584_v7 }
 0x19a   : > { %v907_v9 = vpop.eup %906 }
 0x19b   : > { %v582_v10 = vmul.f32 0.6931472, %v907_v9 }
 0x19d   : > { %v588_v12 = vsel %vm587_vm4, %v585_v11, %v582_v10 }
 0x19e   : > { %v589_v13 = vsel %vm576_vm5, %v574_v1, %v588_v12 }
 0x19f   : > { %626 = vmatmul.f32.vlgmr.msra.gmra.mxu3 %v589_v13 }
 0x222   : > { %v627_v15 = vpop.f32.mrf.mxu3 }
 0x223   : > { %v628_v16 = vadd.f32 %v899_v14, %v627_v15 }
 0x225   : > { %630 = vst [vmem:[%s454_s27] sm:$0xff] %v628_v16 }
 0x226   : > { %1115 = shalt.err (!%p1112_p10)
}
 0x227   : > { %823 = dma.vmem_to_hbm [thread:$0]  (%p1315_p4), %s645_s3, 128, %s647_s11, %s632_s20  }
 0x228 PF: > { %s1477_s7 = sld [smem:[#allocation21_spill]]  ;;  %s658_s22 = sand.u32 1, %s1158_s30  }
 0x229   : > { %s659_s28 = scalar_lea.sflag [#allocation4], %s658_s22 }
 0x22e   : > { %p1478_p11 = scmp.ge.s32.totalorder %s1477_s7, 2 }
 0x230   : > { %p846_p5 = pnand %p1478_p11, %p1319_p6 }
 0x232   : > { %p847_p13 = pneg %p846_p5 }
 0x234   : > { %1153 = dma.done.wait (%p847_p13), %s659_s28, 128  }
 0x235   : > { %1155 = vsyncadd (%p847_p13), %s659_s28, 4294967168  ;;  %s1479_s12 = sld [smem:[#allocation22_spill]]  ;;  %s1482_s30 = smov %s1162_s10 }
 0x236   : > { %s1480_s5 = sld [smem:[#allocation20_spill]] }
 0x237   : > { %s1481_s11 = sld [smem:[#allocation23_spill]] }
 0x23b   : > { %p27_p0 = scmp.ge.s32.totalorder %s1479_s12, 4  }
 0x23c   : > { %s1483_s10 = smov %s1480_s5 }
 0x23d   :  { %29 = sbr.rel (!%p27_p0) target bundleno = 14 (0xe), region = 130 }
 0x242   :  { %665 = vsyncpa [#allocation3], 1 }
 0x243   :  { %667 = vsyncpa [#allocation3 + $0x1], 1 }
 0x244   :  { %668 = vsyncpa [#allocation6], 1 }
 0x245   :  { %670 = vsyncpa [#allocation6 + $0x1], 1 }
 0x246   :  { %671 = vsyncpa [#allocation9], 1 }
 0x247   :  { %672 = vsyncpa [#allocation12], 1 }
 0x248   :  { %673 = vsyncpa [#allocation4], 1 }
 0x249   :  { %675 = vsyncpa [#allocation4 + $0x1], 1 }

</bundles_post_ra>
